<compile_context>
chip_gen: v7x
topology: tpu7x:2x2x1
jax: 0.10.0
libtpu: 0.0.40
codegen_flags: <defaults>
</compile_context>

<pallas_src>
import jax
import jax.numpy as jnp
from jax.experimental import pallas as pl
from jax.experimental.pallas import tpu as pltpu


def _round_up(n, m):
    return ((n + m - 1) // m) * m


def encoder_kernel(x_ref, w1_ref, b1_ref, w2_ref, b2_ref, w3_ref, b3_ref, out_ref):
    # fc1 + relu  (bf16 operands, f32 MXU accumulation)
    h1 = jnp.dot(x_ref[...], w1_ref[...], preferred_element_type=jnp.float32)
    h1 = jnp.maximum(h1 + b1_ref[...], 0.0)
    # fc2 + relu
    h2 = jnp.dot(h1.astype(jnp.bfloat16), w2_ref[...],
                 preferred_element_type=jnp.float32)
    h2 = jnp.maximum(h2 + b2_ref[...], 0.0)
    # fused fc3_mu || fc3_logvar (lane-padded to 128) -> one lane-dense store
    out = jnp.dot(h2.astype(jnp.bfloat16), w3_ref[...],
                  preferred_element_type=jnp.float32)
    out_ref[...] = (out + b3_ref[...]).astype(out_ref.dtype)


def encoder_forward(x, params, *, batch_tile=256):
    """x: (B, input_dim) float32 -> (mu, logvar), each (B, latent_dim) float32."""
    w1, b1, w2, b2, wmu, bmu, wlv, blv = params
    B, input_dim = x.shape
    latent_dim = wmu.shape[1]

    # ---- fuse the two latent heads; pad output lanes to a multiple of 128 ----
    head = 2 * latent_dim
    head_pad = max(_round_up(head, 128), 128)
    w3 = jnp.zeros((wmu.shape[0], head_pad), jnp.float32)
    w3 = w3.at[:, :latent_dim].set(wmu).at[:, latent_dim:head].set(wlv)
    b3 = jnp.zeros((1, head_pad), jnp.float32)
    b3 = b3.at[:, :latent_dim].set(bmu[0]).at[:, latent_dim:head].set(blv[0])

    # ---- bf16 weights / activations (halves weight DMA bytes, 2x MXU rate) ---
    x_bf = x.astype(jnp.bfloat16)
    w1_bf = w1.astype(jnp.bfloat16)
    w2_bf = w2.astype(jnp.bfloat16)
    w3_bf = w3.astype(jnp.bfloat16)

    # ---- batch tiling: multiple of 8 sublanes; pad B so grid divides evenly --
    bt = _round_up(min(batch_tile, _round_up(B, 8)), 8)
    B_pad = _round_up(B, bt)
    if B_pad != B:
        x_bf = jnp.pad(x_bf, ((0, B_pad - B), (0, 0)))
    grid = (B_pad // bt,)

    def full_spec(shape):
        # Grid-invariant block: DMA'd once, resident in VMEM for all tiles.
        return pl.BlockSpec(shape, lambda i: tuple(0 for _ in shape))

    out = pl.pallas_call(
        encoder_kernel,
        out_shape=jax.ShapeDtypeStruct((B_pad, head_pad), jnp.float32),
        grid_spec=pltpu.PrefetchScalarGridSpec(
            num_scalar_prefetch=0,
            grid=grid,
            in_specs=[
                pl.BlockSpec((bt, input_dim), lambda i: (i, 0)),   # x tile
                full_spec(w1_bf.shape), full_spec(b1.shape),        # fc1
                full_spec(w2_bf.shape), full_spec(b2.shape),        # fc2
                full_spec(w3_bf.shape), full_spec(b3.shape),        # fused heads
            ],
            out_specs=pl.BlockSpec((bt, head_pad), lambda i: (i, 0)),
        ),
        compiler_params=pltpu.CompilerParams(
            dimension_semantics=("parallel",)),
    )(x_bf, w1_bf, b1, w2_bf, b2, w3_bf, b3)

    mu = out[:B, :latent_dim]
    logvar = out[:B, latent_dim:head]
    return mu, logvar


def init_params(key, input_dim, latent_dim):
    """Deterministic synthetic parameters with the shapes implied by __init__."""
    ks = jax.random.split(key, 8)

    def linear(kw, kb, fan_in, fan_out):
        bound = 1.0 / jnp.sqrt(fan_in)
        w = jax.random.uniform(kw, (fan_in, fan_out), jnp.float32, -bound, bound)
        b = jax.random.uniform(kb, (1, fan_out), jnp.float32, -bound, bound)
        return w, b

    w1, b1 = linear(ks[0], ks[1], input_dim, 512)
    w2, b2 = linear(ks[2], ks[3], 512, 256)
    wmu, bmu = linear(ks[4], ks[5], 256, latent_dim)
    wlv, blv = linear(ks[6], ks[7], 256, latent_dim)
    return (w1, b1, w2, b2, wmu, bmu, wlv, blv)


def encoder_reference_f32(x, params):
    """Pure-JAX f32 reference of the PyTorch forward pass."""
    w1, b1, w2, b2, wmu, bmu, wlv, blv = params
    h1 = jnp.maximum(x @ w1 + b1, 0.0)
    h2 = jnp.maximum(h1 @ w2 + b2, 0.0)
    return h2 @ wmu + bmu, h2 @ wlv + blv


def encoder_reference_bf16(x, params, latent_dim):
    """Reference mirroring the kernel's bf16-operand / f32-accumulate arithmetic."""
    w1, b1, w2, b2, wmu, bmu, wlv, blv = params
    bf = jnp.bfloat16
    h1 = jnp.dot(x.astype(bf), w1.astype(bf), preferred_element_type=jnp.float32)
    h1 = jnp.maximum(h1 + b1, 0.0)
    h2 = jnp.dot(h1.astype(bf), w2.astype(bf), preferred_element_type=jnp.float32)
    h2 = jnp.maximum(h2 + b2, 0.0)
    w3 = jnp.concatenate([wmu, wlv], axis=1).astype(bf)
    b3 = jnp.concatenate([bmu, blv], axis=1)
    out = jnp.dot(h2.astype(bf), w3, preferred_element_type=jnp.float32) + b3
    return out[:, :latent_dim], out[:, latent_dim:]


if __name__ == "__main__":
    key = jax.random.PRNGKey(0)
    k_param, k_x, k_x2 = jax.random.split(key, 3)

    input_dim, latent_dim = 64, 32
    params = init_params(k_param, input_dim, latent_dim)

    # --- small batch (whole batch in one grid step) ---
    batch = 8
    x = jax.random.normal(k_x, (batch, input_dim), jnp.float32)
    mu, logvar = encoder_forward(x, params, batch_tile=256)
    mu = jax.block_until_ready(mu)
    logvar = jax.block_until_ready(logvar)
    assert mu.shape == (batch, latent_dim) and logvar.shape == (batch, latent_dim)

    mu_bf, lv_bf = encoder_reference_bf16(x, params, latent_dim)
    assert jnp.allclose(mu, mu_bf, atol=1e-4, rtol=1e-4)
    assert jnp.allclose(logvar, lv_bf, atol=1e-4, rtol=1e-4)
    mu_f32, lv_f32 = encoder_reference_f32(x, params)
    assert jnp.allclose(mu, mu_f32, atol=1e-1, rtol=1e-1)       # bf16 weights, f32 acc
    assert jnp.allclose(logvar, lv_f32, atol=1e-1, rtol=1e-1)

    # --- larger, non-tile-multiple batch (exercises padding + multi-step grid) ---
    batch2 = 300
    x2 = jax.random.normal(k_x2, (batch2, input_dim), jnp.float32)
    mu2, logvar2 = encoder_forward(x2, params, batch_tile=128)
    mu2 = jax.block_until_ready(mu2)
    logvar2 = jax.block_until_ready(logvar2)
    assert mu2.shape == (batch2, latent_dim) and logvar2.shape == (batch2, latent_dim)

    mu2_bf, lv2_bf = encoder_reference_bf16(x2, params, latent_dim)
    assert jnp.allclose(mu2, mu2_bf, atol=1e-4, rtol=1e-4)
    assert jnp.allclose(logvar2, lv2_bf, atol=1e-4, rtol=1e-4)

    print("KERNEL_OK")
</pallas_src>

<mosaic_0001>
module attributes {stable_mosaic.version = 11 : i64} {
  func.func @encoder_kernel(%arg0: i32, %arg1: memref<8x64xbf16, #tpu.memory_space<vmem>>, %arg2: memref<64x512xbf16, #tpu.memory_space<vmem>>, %arg3: memref<1x512xf32, #tpu.memory_space<vmem>>, %arg4: memref<512x256xbf16, #tpu.memory_space<vmem>>, %arg5: memref<1x256xf32, #tpu.memory_space<vmem>>, %arg6: memref<256x128xbf16, #tpu.memory_space<vmem>>, %arg7: memref<1x128xf32, #tpu.memory_space<vmem>>, %arg8: memref<8x128xf32, #tpu.memory_space<vmem>>) attributes {dimension_semantics = [#tpu.dimension_semantics<parallel>], iteration_bounds = array<i64: 1>, scalar_prefetch = 0 : i64, scratch_operands = 0 : i64, tpu.core_type = #tpu.core_type<tc>, window_params = [{transform_indices = @transform_0, window_bounds = array<i64: 8, 64>}, {pipeline_mode = #tpu.pipeline_mode<synchronous>, transform_indices = @transform_1, window_bounds = array<i64: 64, 512>}, {pipeline_mode = #tpu.pipeline_mode<synchronous>, transform_indices = @transform_2, window_bounds = array<i64: 1, 512>}, {pipeline_mode = #tpu.pipeline_mode<synchronous>, transform_indices = @transform_3, window_bounds = array<i64: 512, 256>}, {pipeline_mode = #tpu.pipeline_mode<synchronous>, transform_indices = @transform_4, window_bounds = array<i64: 1, 256>}, {pipeline_mode = #tpu.pipeline_mode<synchronous>, transform_indices = @transform_5, window_bounds = array<i64: 256, 128>}, {pipeline_mode = #tpu.pipeline_mode<synchronous>, transform_indices = @transform_6, window_bounds = array<i64: 1, 128>}, {transform_indices = @transform_7, window_bounds = array<i64: 8, 128>}]} {
    %c0 = arith.constant 0 : index
    %c0_0 = arith.constant 0 : index
    %0 = vector.load %arg1[%c0, %c0_0] : memref<8x64xbf16, #tpu.memory_space<vmem>>, vector<8x64xbf16>
    %c0_1 = arith.constant 0 : index
    %c0_2 = arith.constant 0 : index
    %1 = vector.load %arg2[%c0_1, %c0_2] : memref<64x512xbf16, #tpu.memory_space<vmem>>, vector<64x512xbf16>
    %cst = arith.constant dense<0.000000e+00> : vector<8x512xf32>
    %2 = tpu.matmul %0, %1, %cst {dimension_numbers = #tpu.dot_dimension_numbers<[1], [0], [0], [1], [0, 0, 1, 1], [], []>} : vector<8x64xbf16>, vector<64x512xbf16>, vector<8x512xf32> -> vector<8x512xf32>
    %c0_3 = arith.constant 0 : index
    %c0_4 = arith.constant 0 : index
    %3 = vector.load %arg3[%c0_3, %c0_4] : memref<1x512xf32, #tpu.memory_space<vmem>>, vector<1x512xf32>
    %4 = vector.broadcast %3 : vector<1x512xf32> to vector<8x512xf32>
    %5 = arith.addf %2, %4 : vector<8x512xf32>
    %cst_5 = arith.constant 0.000000e+00 : f32
    %6 = vector.broadcast %cst_5 : f32 to vector<8x512xf32>
    %7 = arith.maximumf %5, %6 : vector<8x512xf32>
    %8 = arith.truncf %7 : vector<8x512xf32> to vector<8x512xbf16>
    %c0_6 = arith.constant 0 : index
    %c0_7 = arith.constant 0 : index
    %9 = vector.load %arg4[%c0_6, %c0_7] : memref<512x256xbf16, #tpu.memory_space<vmem>>, vector<512x256xbf16>
    %cst_8 = arith.constant dense<0.000000e+00> : vector<8x256xf32>
    %10 = tpu.matmul %8, %9, %cst_8 {dimension_numbers = #tpu.dot_dimension_numbers<[1], [0], [0], [1], [0, 0, 1, 1], [], []>} : vector<8x512xbf16>, vector<512x256xbf16>, vector<8x256xf32> -> vector<8x256xf32>
    %c0_9 = arith.constant 0 : index
    %c0_10 = arith.constant 0 : index
    %11 = vector.load %arg5[%c0_9, %c0_10] : memref<1x256xf32, #tpu.memory_space<vmem>>, vector<1x256xf32>
    %12 = vector.broadcast %11 : vector<1x256xf32> to vector<8x256xf32>
    %13 = arith.addf %10, %12 : vector<8x256xf32>
    %cst_11 = arith.constant 0.000000e+00 : f32
    %14 = vector.broadcast %cst_11 : f32 to vector<8x256xf32>
    %15 = arith.maximumf %13, %14 : vector<8x256xf32>
    %16 = arith.truncf %15 : vector<8x256xf32> to vector<8x256xbf16>
    %c0_12 = arith.constant 0 : index
    %c0_13 = arith.constant 0 : index
    %17 = vector.load %arg6[%c0_12, %c0_13] : memref<256x128xbf16, #tpu.memory_space<vmem>>, vector<256x128xbf16>
    %cst_14 = arith.constant dense<0.000000e+00> : vector<8x128xf32>
    %18 = tpu.matmul %16, %17, %cst_14 {dimension_numbers = #tpu.dot_dimension_numbers<[1], [0], [0], [1], [0, 0, 1, 1], [], []>} : vector<8x256xbf16>, vector<256x128xbf16>, vector<8x128xf32> -> vector<8x128xf32>
    %c0_15 = arith.constant 0 : index
    %c0_16 = arith.constant 0 : index
    %19 = vector.load %arg7[%c0_15, %c0_16] : memref<1x128xf32, #tpu.memory_space<vmem>>, vector<1x128xf32>
    %20 = vector.broadcast %19 : vector<1x128xf32> to vector<8x128xf32>
    %21 = arith.addf %18, %20 : vector<8x128xf32>
    %c0_17 = arith.constant 0 : index
    %c0_18 = arith.constant 0 : index
    %22 = vector.load %arg8[%c0_17, %c0_18] : memref<8x128xf32, #tpu.memory_space<vmem>>, vector<8x128xf32>
    tpu.vector_store %arg8[%c0_17, %c0_18], %21 {strides = array<i32>} : memref<8x128xf32, #tpu.memory_space<vmem>>, vector<8x128xf32>,
    return
  }
  func.func @transform_0(%arg0: i32) -> (i32, i32) {
    %c0_i32 = arith.constant 0 : i32
    %c0_i32_0 = arith.constant 0 : i32
    return %arg0, %c0_i32 : i32, i32
  }
  func.func @transform_1(%arg0: i32) -> (i32, i32) {
    %c0_i32 = arith.constant 0 : i32
    %c0_i32_0 = arith.constant 0 : i32
    %c0_i32_1 = arith.constant 0 : i32
    return %c0_i32, %c0_i32_0 : i32, i32
  }
  func.func @transform_2(%arg0: i32) -> (i32, i32) {
    %c0_i32 = arith.constant 0 : i32
    %c0_i32_0 = arith.constant 0 : i32
    %c0_i32_1 = arith.constant 0 : i32
    return %c0_i32, %c0_i32_0 : i32, i32
  }
  func.func @transform_3(%arg0: i32) -> (i32, i32) {
    %c0_i32 = arith.constant 0 : i32
    %c0_i32_0 = arith.constant 0 : i32
    %c0_i32_1 = arith.constant 0 : i32
    return %c0_i32, %c0_i32_0 : i32, i32
  }
  func.func @transform_4(%arg0: i32) -> (i32, i32) {
    %c0_i32 = arith.constant 0 : i32
    %c0_i32_0 = arith.constant 0 : i32
    %c0_i32_1 = arith.constant 0 : i32
    return %c0_i32, %c0_i32_0 : i32, i32
  }
  func.func @transform_5(%arg0: i32) -> (i32, i32) {
    %c0_i32 = arith.constant 0 : i32
    %c0_i32_0 = arith.constant 0 : i32
    %c0_i32_1 = arith.constant 0 : i32
    return %c0_i32, %c0_i32_0 : i32, i32
  }
  func.func @transform_6(%arg0: i32) -> (i32, i32) {
    %c0_i32 = arith.constant 0 : i32
    %c0_i32_0 = arith.constant 0 : i32
    %c0_i32_1 = arith.constant 0 : i32
    return %c0_i32, %c0_i32_0 : i32, i32
  }
  func.func @transform_7(%arg0: i32) -> (i32, i32) {
    %c0_i32 = arith.constant 0 : i32
    %c0_i32_0 = arith.constant 0 : i32
    return %arg0, %c0_i32 : i32, i32
  }
}

</mosaic_0001>

<bundles_post_ra>
// kernel: tpu_custom_call.1
= control target key start
LH: loop header
LB: loop body
LE: loop exit
PB: predicated region body
PF: predicated region fallthrough
CT: control target
= control target key end

     0   :  { %12 = vsyncpa [#allocation3], 0  ;;  %s1497_s0 = inlined_call_operand.hbm [shape: bf16[8,64], index: 0, kind: input, shape index: {}]   ;;  %s1498_s1 = inlined_call_operand.hbm [shape: bf16[64,512], index: 1, kind: input, shape index: {}]   ;;  %s1499_s2 = inlined_call_operand.vmem [shape: f32[1,512], index: 2, kind: input, shape index: {}]   ;;  %s1500_s3 = inlined_call_operand.hbm [shape: bf16[512,256], index: 3, kind: input, shape index: {}]   ;;  %s1501_s4 = inlined_call_operand.vmem [shape: f32[1,256], index: 4, kind: input, shape index: {}]   ;;  %s1502_s5 = inlined_call_operand.hbm [shape: bf16[256,128], index: 5, kind: input, shape index: {}]   ;;  %s1503_s6 = inlined_call_operand.vmem [shape: f32[1,128], index: 6, kind: input, shape index: {}]   ;;  %s1504_s7 = inlined_call_operand.hbm [shape: f32[8,128], index: 7, kind: output, shape index: {}]  }
   0x1   :  { %13 = vsyncpa [#allocation6], 0 }
   0x2   :  { %14 = vsyncpa [#allocation9], 0 }
   0x3   :  { %15 = vsyncpa [#allocation4], 0  ;;  %s1360_s24 = smov [#allocation5]   ;;  %s1242_s28 = scalar_lea.hbm %s1498_s1, 2048 }
   0x4   :  { %s31_s25 = sshll.u32 %s1360_s24, 4  ;;  %p1243_p0 = scmp.ne.s32.totalorder %s1498_s1, %s1242_s28  ;;  %s32_s25 = int_to_ptr.vmem [resolvable:$true] %s31_s25 }
   0x5   :  { %p1246_p1 = scmp.lt.u32.totalorder %s1242_s28, %s1498_s1 }
   0x7   :  { %p1248_p2 = pnand %p1246_p1, %p1243_p0 }
   0x9   :  { %1251 = shalt.err (!%p1248_p2)
}
   0xa   :  { %s1252_s10 = scalar_lea.vmem %s32_s25, 2048  ;;  %p1257_p4 = scmp.lt.s32.totalorder %s32_s25, %s32_s25 }
   0xb   :  { %p1253_p3 = scmp.ne.s32.totalorder %s32_s25, %s1252_s10  ;;  %p1258_p5 = scmp.lt.s32.totalorder %s1252_s10, %s1252_s10 }
   0xd   :  { %p1259_p6 = por %p1258_p5, %p1257_p4 }
   0xf   :  { %p1260_p7 = pnand %p1259_p6, %p1253_p3 }
  0x11   :  { %1263 = shalt.err (!%p1260_p7)
}
  0x12   :  { %s1361_s11 = smov 256   ;;  %s1362_s12 = smov 16  }
  0x13   :  { %37 = dma.hbm_to_vmem [thread:$0]  %s1498_s1, 2048, %s32_s25, [#allocation6], %s1361_s11, %s1361_s11, %s1362_s12  }
  0x14   :  { %s1363_s15 = smov [#allocation2]   ;;  %s1364_s17 = smov [#allocation7]  }
  0x15   :  { %s22_s16 = sshll.u32 %s1363_s15, 4  ;;  %s45_s18 = sshll.u32 %s1364_s17, 4  ;;  %s23_s16 = int_to_ptr.vmem [resolvable:$true] %s22_s16  ;;  %s46_s18 = int_to_ptr.vmem [resolvable:$true] %s45_s18 }
  0x16   :  { %s1264_s21 = scalar_lea.hbm %s1497_s0, 64 }
  0x17   :  { %p1265_p8 = scmp.ne.s32.totalorder %s1497_s0, %s1264_s21  ;;  %p1268_p9 = scmp.lt.u32.totalorder %s1264_s21, %s1497_s0 }
  0x19   :  { %p1270_p10 = pnand %p1268_p9, %p1265_p8 }
  0x1b   :  { %1273 = shalt.err (!%p1270_p10)
}
  0x1c   :  { %s1274_s1 = scalar_lea.vmem %s23_s16, 64  ;;  %p1279_p12 = scmp.lt.s32.totalorder %s23_s16, %s23_s16 }
  0x1d   :  { %p1275_p11 = scmp.ne.s32.totalorder %s23_s16, %s1274_s1  ;;  %p1280_p13 = scmp.lt.s32.totalorder %s1274_s1, %s1274_s1 }
  0x1f   :  { %p1281_p0 = por %p1280_p13, %p1279_p12 }
  0x21   :  { %p1282_p1 = pnand %p1281_p0, %p1275_p11 }
  0x23   :  { %1285 = shalt.err (!%p1282_p1)
}
  0x24   :  { %25 = dma.hbm_to_vmem [thread:$0]  %s1497_s0, 64, %s23_s16, [#allocation3]  }
  0x25   :  { %s1286_s30 = scalar_lea.hbm %s1500_s3, 8192 }
  0x26   :  { %p1287_p2 = scmp.ne.s32.totalorder %s1500_s3, %s1286_s30  ;;  %p1290_p3 = scmp.lt.u32.totalorder %s1286_s30, %s1500_s3 }
  0x28   :  { %p1292_p4 = pnand %p1290_p3, %p1287_p2 }
  0x2a   :  { %1295 = shalt.err (!%p1292_p4)
}
  0x2b   :  { %s1296_s12 = scalar_lea.vmem %s46_s18, 8192  ;;  %p1301_p6 = scmp.lt.s32.totalorder %s46_s18, %s46_s18 }
  0x2c   :  { %p1297_p5 = scmp.ne.s32.totalorder %s46_s18, %s1296_s12  ;;  %p1302_p7 = scmp.lt.s32.totalorder %s1296_s12, %s1296_s12 }
  0x2e   :  { %p1303_p8 = por %p1302_p7, %p1301_p6 }
  0x30   :  { %p1304_p9 = pnand %p1303_p8, %p1297_p5 }
  0x32   :  { %1307 = shalt.err (!%p1304_p9)
}
  0x33   :  { %s1365_s0 = smov 128   ;;  %s1366_s13 = smov 8  }
  0x34   :  { %51 = dma.hbm_to_vmem [thread:$0]  %s1500_s3, 8192, %s46_s18, [#allocation6], %s1365_s0, %s1365_s0, %s1366_s13  }
  0x35   :  { %s1367_s16 = smov [#allocation8]   ;;  %s1308_s21 = scalar_lea.hbm %s1502_s5, 2048 }
  0x36   :  { %s59_s17 = sshll.u32 %s1367_s16, 4  ;;  %p1309_p10 = scmp.ne.s32.totalorder %s1502_s5, %s1308_s21  ;;  %s60_s17 = int_to_ptr.vmem [resolvable:$true] %s59_s17 }
  0x37   :  { %p1312_p11 = scmp.lt.u32.totalorder %s1308_s21, %s1502_s5 }
  0x39   :  { %p1314_p12 = pnand %p1312_p11, %p1309_p10 }
  0x3b   :  { %1317 = shalt.err (!%p1314_p12)
}
  0x3c   :  { %s1318_s1 = scalar_lea.vmem %s60_s17, 2048  ;;  %p1323_p0 = scmp.lt.s32.totalorder %s60_s17, %s60_s17 }
  0x3d   :  { %p1319_p13 = scmp.ne.s32.totalorder %s60_s17, %s1318_s1  ;;  %p1324_p1 = scmp.lt.s32.totalorder %s1318_s1, %s1318_s1 }
  0x3f   :  { %p1325_p2 = por %p1324_p1, %p1323_p0 }
  0x41   :  { %p1326_p3 = pnand %p1325_p2, %p1319_p13 }
  0x43   :  { %1329 = shalt.err (!%p1326_p3)
}
  0x44   :  { %s1368_s3 = smov 64   ;;  %s1369_s18 = smov 4  }
  0x45   :  { %65 = dma.hbm_to_vmem [thread:$0]  %s1502_s5, 2048, %s60_s17, [#allocation9], %s1368_s3, %s1368_s3, %s1369_s18  }
  0x46   :  { %1352 = dma.done.wait [#allocation3], 64  }
  0x47   :  { %1353 = vsyncadd [#allocation3], 4294967232 }
  0x48   :  { %1354 = dma.done.wait [#allocation6], 10240  }
  0x49   :  { %1355 = vsyncadd [#allocation6], 4294957056 }
  0x4a   :  { %1356 = dma.done.wait [#allocation9], 2048  }
  0x4b   :  { %1357 = vsyncadd [#allocation9], 4294965248  ;;  %v1370_v0 = vmov 0   ;;  %v1106_v1 = vld [vmem:[#allocation5 + $0x4] ss:$16 sps:$4 sm:$0xff]   ;;  %vm200_vm0 = vcmask 523264  }
  0x4c   :  { %236 = vmatprep.mubr.bf16.mxu0 %v1370_v0  ;;  %v1108_v2 = vld [vmem:[#allocation5] ss:$16 sps:$4 sm:$0xff]   ;;  %204 = vmatprep.subr.bf16.mxu0 %v1106_v1  ;;  %v1109_v3 = vld [vmem:[#allocation5 + $0x24] ss:$16 sps:$4 sm:$0xff]   ;;  %v1120_v9 = vld [vmem:[#allocation5 + $0xc] ss:$16 sps:$4 sm:$0xff]  }
  0x4d   :  { %205 = vmatpush1.bf16.msra.mxu0 %v1108_v2  ;;  %v1111_v4 = vld [vmem:[#allocation5 + $0x20] ss:$16 sps:$4 sm:$0xff]   ;;  %v1112_v5 = vld [vmem:[#allocation5 + $0x44] ss:$16 sps:$4 sm:$0xff]   ;;  %v81_v12 = vld [vmem:[#allocation2] sm:$0xf] }
  0x4e   :  { %206 = vmatprep.subr.bf16.mxu0 %v1109_v3  ;;  %v1114_v6 = vld [vmem:[#allocation5 + $0x40] ss:$16 sps:$4 sm:$0xff]   ;;  %v1115_v7 = vld [vmem:[#allocation5 + $0x64] ss:$16 sps:$4 sm:$0xff]   ;;  %v1118_v14 = vld [vmem:[#allocation5 + $0x8] ss:$16 sps:$4 sm:$0xff]  }
  0x4f   :  { %v1117_v8 = vld [vmem:[#allocation5 + $0x60] ss:$16 sps:$4 sm:$0xff]   ;;  %v1130_v10 = vld [vmem:[#allocation7 + $0x4] ss:$8 sps:$4 sm:$0xff]   ;;  %v1133_v13 = vld [vmem:[#allocation7 + $0x14] ss:$8 sps:$4 sm:$0xff]  }
  0x50   :  { %v1132_v11 = vld [vmem:[#allocation7] ss:$8 sps:$4 sm:$0xff]   ;;  %690 = vmatprep.subr.bf16.mxu1 %v1130_v10  ;;  %v1135_v15 = vld [vmem:[#allocation7 + $0x10] ss:$8 sps:$4 sm:$0xff]   ;;  %v1123_v16 = vld [vmem:[#allocation5 + $0x2c] ss:$16 sps:$4 sm:$0xff]  }
  0x51   :  { %207 = vmatpush1.bf16.msra.mxu0 %v1111_v4  ;;  %691 = vmatpush1.bf16.msra.mxu1 %v1132_v11  ;;  %v1136_v17 = vld [vmem:[#allocation7 + $0x24] ss:$8 sps:$4 sm:$0xff]   ;;  %v1121_v18 = vld [vmem:[#allocation5 + $0x28] ss:$16 sps:$4 sm:$0xff]   ;;  %v1139_v20 = vld [vmem:[#allocation7 + $0x34] ss:$8 sps:$4 sm:$0xff]  }
  0x52   :  { %208 = vmatprep.subr.bf16.mxu0 %v1112_v5  ;;  %692 = vmatprep.subr.bf16.mxu1 %v1133_v13  ;;  %v1138_v19 = vld [vmem:[#allocation7 + $0x20] ss:$8 sps:$4 sm:$0xff]   ;;  %v1126_v21 = vld [vmem:[#allocation5 + $0x4c] ss:$16 sps:$4 sm:$0xff]   ;;  %v1141_v22 = vld [vmem:[#allocation7 + $0x30] ss:$8 sps:$4 sm:$0xff]  }
  0x53   :  { %v1124_v23 = vld [vmem:[#allocation5 + $0x48] ss:$16 sps:$4 sm:$0xff]   ;;  %v1142_v24 = vld [vmem:[#allocation7 + $0x44] ss:$8 sps:$4 sm:$0xff]   ;;  %v1148_v28 = vld [vmem:[#allocation7 + $0x54] ss:$8 sps:$4 sm:$0xff]  }
  0x54   :  { %v1129_v25 = vld [vmem:[#allocation5 + $0x6c] ss:$16 sps:$4 sm:$0xff]   ;;  %v1127_v26 = vld [vmem:[#allocation5 + $0x68] ss:$16 sps:$4 sm:$0xff]   ;;  %s1371_s8 = smov [#allocation10]  }
  0x55   :  { %209 = vmatpush1.bf16.msra.mxu0 %v1114_v6  ;;  %693 = vmatpush1.bf16.msra.mxu1 %v1135_v15  ;;  %v1147_v27 = vld [vmem:[#allocation7 + $0x40] ss:$8 sps:$4 sm:$0xff]   ;;  %v1146_v29 = vld [vmem:[#allocation7 + $0x104] ss:$8 sps:$4 sm:$0xff]   ;;  %v1153_v30 = vld [vmem:[#allocation7 + $0x50] ss:$8 sps:$4 sm:$0xff]  }
  0x56   :  { %210 = vmatprep.subr.bf16.mxu0 %v1115_v7  ;;  %694 = vmatprep.subr.bf16.mxu1 %v1136_v17  ;;  %v1144_v31 = vld [vmem:[#allocation7 + $0x100] ss:$8 sps:$4 sm:$0xff]   ;;  %v1154_v32 = vld [vmem:[#allocation7 + $0x64] ss:$8 sps:$4 sm:$0xff]   ;;  %v1152_v33 = vld [vmem:[#allocation7 + $0x114] ss:$8 sps:$4 sm:$0xff]  }
  0x57   :  { %v1150_v34 = vld [vmem:[#allocation7 + $0x110] ss:$8 sps:$4 sm:$0xff]   ;;  %v1159_v35 = vld [vmem:[#allocation7 + $0x60] ss:$8 sps:$4 sm:$0xff]   ;;  %v1160_v36 = vld [vmem:[#allocation7 + $0x74] ss:$8 sps:$4 sm:$0xff]  }
  0x58   :  { %v1158_v37 = vld [vmem:[#allocation7 + $0x124] ss:$8 sps:$4 sm:$0xff]   ;;  %v1165_v38 = vld [vmem:[#allocation7 + $0x70] ss:$8 sps:$4 sm:$0xff]   ;;  %v1156_v39 = vld [vmem:[#allocation7 + $0x120] ss:$8 sps:$4 sm:$0xff]  }
  0x59   :  { %211 = vmatpush1.bf16.msra.mxu0 %v1117_v8  ;;  %695 = vmatpush1.bf16.msra.mxu1 %v1138_v19  ;;  %v1166_v40 = vld [vmem:[#allocation7 + $0x84] ss:$8 sps:$4 sm:$0xff]   ;;  %v1164_v41 = vld [vmem:[#allocation7 + $0x134] ss:$8 sps:$4 sm:$0xff]   ;;  %v1162_v42 = vld [vmem:[#allocation7 + $0x130] ss:$8 sps:$4 sm:$0xff]   ;;  %v100_v19 = vlaneseq }
  0x5a   :  { %245 = vmatprep.subr.bf16.mxu0 %v1120_v9  ;;  %696 = vmatprep.subr.bf16.mxu1 %v1139_v20  ;;  %v1170_v43 = vld [vmem:[#allocation7 + $0x144] ss:$8 sps:$4 sm:$0xff]   ;;  %v1171_v44 = vld [vmem:[#allocation7 + $0x80] ss:$8 sps:$4 sm:$0xff]   ;;  %v1172_v45 = vld [vmem:[#allocation7 + $0x94] ss:$8 sps:$4 sm:$0xff]  }
  0x5b   :  { %v1177_v46 = vld [vmem:[#allocation7 + $0x90] ss:$8 sps:$4 sm:$0xff]   ;;  %v1168_v47 = vld [vmem:[#allocation7 + $0x140] ss:$8 sps:$4 sm:$0xff]   ;;  %v1178_v48 = vld [vmem:[#allocation7 + $0xa4] ss:$8 sps:$4 sm:$0xff]  }
  0x5c   :  { %985 = vmatmul.mubr.msk.bf16.vlgmr.msra.gmra.mrb[0].mxu0 %vm200_vm0, %v81_v12  ;;  %v1176_v49 = vld [vmem:[#allocation7 + $0x154] ss:$8 sps:$4 sm:$0xff]   ;;  %v1183_v50 = vld [vmem:[#allocation7 + $0xa0] ss:$8 sps:$4 sm:$0xff]   ;;  %v1174_v51 = vld [vmem:[#allocation7 + $0x150] ss:$8 sps:$4 sm:$0xff]  }
  0x5d   :  { %246 = vmatpush1.bf16.msra.mxu0 %v1118_v14  ;;  %277 = vmatprep.mubr.bf16.mxu0 %v1370_v0  ;;  %v1184_v52 = vld [vmem:[#allocation7 + $0xb4] ss:$8 sps:$4 sm:$0xff]   ;;  %v1182_v53 = vld [vmem:[#allocation7 + $0x164] ss:$8 sps:$4 sm:$0xff]   ;;  %v1189_v54 = vld [vmem:[#allocation7 + $0xb0] ss:$8 sps:$4 sm:$0xff]  }
  0x5e   :  { %247 = vmatprep.subr.bf16.mxu0 %v1123_v16  ;;  %697 = vmatpush1.bf16.msra.mxu1 %v1141_v22  ;;  %v1180_v55 = vld [vmem:[#allocation7 + $0x160] ss:$8 sps:$4 sm:$0xff]   ;;  %v1190_v56 = vld [vmem:[#allocation7 + $0xc4] ss:$8 sps:$4 sm:$0xff]   ;;  %v1188_v57 = vld [vmem:[#allocation7 + $0x174] ss:$8 sps:$4 sm:$0xff]  }
  0x5f   :  { %698 = vmatprep.subr.bf16.mxu1 %v1142_v24  ;;  %v1195_v58 = vld [vmem:[#allocation7 + $0xc0] ss:$8 sps:$4 sm:$0xff]   ;;  %v1186_v59 = vld [vmem:[#allocation7 + $0x170] ss:$8 sps:$4 sm:$0xff]   ;;  %v1196_v60 = vld [vmem:[#allocation7 + $0xd4] ss:$8 sps:$4 sm:$0xff]  }
  0x60   :  { %v1194_v61 = vld [vmem:[#allocation7 + $0x184] ss:$8 sps:$4 sm:$0xff]   ;;  %v1201_v62 = vld [vmem:[#allocation7 + $0xd0] ss:$8 sps:$4 sm:$0xff]   ;;  %v1192_v63 = vld [vmem:[#allocation7 + $0x180] ss:$8 sps:$4 sm:$0xff]  }
  0x61   :  { %248 = vmatpush1.bf16.msra.mxu0 %v1121_v18  ;;  %v1200_v0 = vld [vmem:[#allocation7 + $0x194] ss:$8 sps:$4 sm:$0xff]   ;;  %v1198_v1 = vld [vmem:[#allocation7 + $0x190] ss:$8 sps:$4 sm:$0xff]   ;;  %v1202_v2 = vld [vmem:[#allocation7 + $0xe4] ss:$8 sps:$4 sm:$0xff]  }
  0x62   :  { %249 = vmatprep.subr.bf16.mxu0 %v1126_v21  ;;  %699 = vmatpush1.bf16.msra.mxu1 %v1147_v27  ;;  %v1206_v3 = vld [vmem:[#allocation7 + $0x1a4] ss:$8 sps:$4 sm:$0xff]   ;;  %v1204_v4 = vld [vmem:[#allocation7 + $0x1a0] ss:$8 sps:$4 sm:$0xff]   ;;  %v1208_v6 = vld [vmem:[#allocation7 + $0xf4] ss:$8 sps:$4 sm:$0xff]  }
  0x63   :  { %700 = vmatprep.subr.bf16.mxu1 %v1148_v28  ;;  %v1207_v5 = vld [vmem:[#allocation7 + $0xe0] ss:$8 sps:$4 sm:$0xff]   ;;  %v1212_v7 = vld [vmem:[#allocation7 + $0x1b4] ss:$8 sps:$4 sm:$0xff]   ;;  %v1210_v8 = vld [vmem:[#allocation7 + $0x1b0] ss:$8 sps:$4 sm:$0xff]  }
  0x64   :  { %v1213_v9 = vld [vmem:[#allocation7 + $0xf0] ss:$8 sps:$4 sm:$0xff]   ;;  %v1216_v10 = vld [vmem:[#allocation7 + $0x1c4] ss:$8 sps:$4 sm:$0xff]   ;;  %v1214_v11 = vld [vmem:[#allocation7 + $0x1c0] ss:$8 sps:$4 sm:$0xff]  }
  0x65   :  { %250 = vmatpush1.bf16.msra.mxu0 %v1124_v23  ;;  %v1217_v13 = vld [vmem:[#allocation7 + $0x1d0] ss:$8 sps:$4 sm:$0xff]   ;;  %v1222_v14 = vld [vmem:[#allocation7 + $0x1e4] ss:$8 sps:$4 sm:$0xff]   ;;  %v1220_v15 = vld [vmem:[#allocation7 + $0x1e0] ss:$8 sps:$4 sm:$0xff]  }
  0x66   :  { %251 = vmatprep.subr.bf16.mxu0 %v1129_v25  ;;  %701 = vmatpush1.bf16.msra.mxu1 %v1153_v30  ;;  %v1225_v16 = vld [vmem:[#allocation7 + $0x1f4] ss:$8 sps:$4 sm:$0xff]   ;;  %v1223_v17 = vld [vmem:[#allocation7 + $0x1f0] ss:$8 sps:$4 sm:$0xff]   ;;  %v1226_v18 = vld [vmem:[#allocation8 + $0x40] sm:$0xff]   ;;  %v1462_v20 = vshrl.u32 %v100_v19, 7 }
  0x67   :  { %702 = vmatprep.subr.bf16.mxu1 %v1154_v32  ;;  %v98_v22 = vld [vmem:[%s1499_s2] sm:$0xf]  ;;  %s958_s9 = sshll.u32 %s1371_s8, 4  ;;  %s959_s9 = int_to_ptr.vmem [resolvable:$true] %s958_s9 }
  0x68   :  { %v102_v21 = vsub.s32 0, %v1462_v20  ;;  %v106_v23 = vsub.s32 1, %v1462_v20  ;;  %s1330_s10 = scalar_lea.vmem %s959_s9, 128  ;;  %p1335_p5 = scmp.lt.s32.totalorder %s959_s9, %s959_s9 }
  0x69   :  { %252 = vmatpush1.bf16.msra.mxu0 %v1127_v26  ;;  %p1331_p4 = scmp.ne.s32.totalorder %s959_s9, %s1330_s10  ;;  %p1336_p6 = scmp.lt.s32.totalorder %s1330_s10, %s1330_s10 }
  0x6a   :  { %731 = vmatprep.subr.bf16.mxu0 %v1146_v29  ;;  %703 = vmatpush1.bf16.msra.mxu1 %v1159_v35  ;;  %v103_v24 = vrot.slane %v98_v22, %v102_v21  ;;  %v107_v25 = vrot.slane %v98_v22, %v106_v23 }
  0x6b   :  { %704 = vmatprep.subr.bf16.mxu1 %v1160_v36  ;;  %v1227_v36 = vld [vmem:[#allocation8] sm:$0xff]   ;;  %p1337_p7 = por %p1336_p6, %p1335_p5 }
  0x6c   :  { %986 = vmatmul.mubr.msk.bf16.vlgmr.msra.gmra.mrb[4].mxu0 %vm200_vm0, %v81_v12  ;;  %v1219_v12 = vld [vmem:[#allocation7 + $0x1d4] ss:$8 sps:$4 sm:$0xff]  }
  0x6d   :  { %732 = vmatpush1.bf16.msra.mxu0 %v1144_v31  ;;  %p1338_p8 = pnand %p1337_p7, %p1331_p4 }
  0x6e   :  { %733 = vmatprep.subr.bf16.mxu0 %v1152_v33  ;;  %705 = vmatpush1.bf16.msra.mxu1 %v1165_v38  ;;  %v110_v38 = vsub.s32 2, %v1462_v20 }
  0x6f   :  { %706 = vmatprep.subr.bf16.mxu1 %v1166_v40  ;;  %v1229_v40 = vld [vmem:[#allocation8 + $0x8] sm:$0xff]  }
  0x71   :  { %734 = vmatpush1.bf16.msra.mxu0 %v1150_v34 }
  0x72   :  { %735 = vmatprep.subr.bf16.mxu0 %v1158_v37  ;;  %707 = vmatpush1.bf16.msra.mxu1 %v1171_v44  ;;  %v1228_v37 = vld [vmem:[#allocation8 + $0x48] sm:$0xff]  }
  0x73   :  { %708 = vmatprep.subr.bf16.mxu1 %v1172_v45 }
  0x75   :  { %736 = vmatpush1.bf16.msra.mxu0 %v1156_v39  ;;  %v114_v39 = vsub.s32 3, %v1462_v20  ;;  %v1051_v20 = vld [vmem:[%s1503_s6] ss:$0 sm:$0xff] }
  0x76   :  { %737 = vmatprep.subr.bf16.mxu0 %v1164_v41  ;;  %709 = vmatpush1.bf16.msra.mxu1 %v1177_v46  ;;  %v111_v41 = vrot.slane %v98_v22, %v110_v38 }
  0x77   :  { %710 = vmatprep.subr.bf16.mxu1 %v1178_v48 }
  0x79   :  { %738 = vmatpush1.bf16.msra.mxu0 %v1162_v42  ;;  %v115_v42 = vrot.slane %v98_v22, %v114_v39 }
  0x7a   :  { %739 = vmatprep.subr.bf16.mxu0 %v1170_v43  ;;  %711 = vmatpush1.bf16.msra.mxu1 %v1183_v50 }
  0x7b   :  { %712 = vmatprep.subr.bf16.mxu1 %v1184_v52 }
  0x7d   :  { %740 = vmatpush1.bf16.msra.mxu0 %v1168_v47 }
  0x7e   :  { %741 = vmatprep.subr.bf16.mxu0 %v1176_v49  ;;  %713 = vmatpush1.bf16.msra.mxu1 %v1189_v54  ;;  %v1231_v54 = vld [vmem:[#allocation8 + $0x10] sm:$0xff]  }
  0x7f   :  { %714 = vmatprep.subr.bf16.mxu1 %v1190_v56  ;;  %v1233_v56 = vld [vmem:[#allocation8 + $0x18] sm:$0xff]  }
  0x81   :  { %742 = vmatpush1.bf16.msra.mxu0 %v1174_v51 }
  0x82   :  { %743 = vmatprep.subr.bf16.mxu0 %v1182_v53  ;;  %715 = vmatpush1.bf16.msra.mxu1 %v1195_v58  ;;  %v1230_v53 = vld [vmem:[#allocation8 + $0x50] sm:$0xff]   ;;  %v1235_v58 = vld [vmem:[#allocation8 + $0x20] sm:$0xff]  }
  0x83   :  { %716 = vmatprep.subr.bf16.mxu1 %v1196_v60  ;;  %v1237_v60 = vld [vmem:[#allocation8 + $0x28] sm:$0xff]  }
  0x85   :  { %744 = vmatpush1.bf16.msra.mxu0 %v1180_v55  ;;  %v1232_v55 = vld [vmem:[#allocation8 + $0x58] sm:$0xff]  }
  0x86   :  { %745 = vmatprep.subr.bf16.mxu0 %v1188_v57  ;;  %717 = vmatpush1.bf16.msra.mxu1 %v1201_v62  ;;  %v1234_v57 = vld [vmem:[#allocation8 + $0x60] sm:$0xff]   ;;  %v1239_v62 = vld [vmem:[#allocation8 + $0x30] sm:$0xff]  }
  0x87   :  { %718 = vmatprep.subr.bf16.mxu1 %v1202_v2 }
  0x89   :  { %746 = vmatpush1.bf16.msra.mxu0 %v1186_v59  ;;  %v1236_v59 = vld [vmem:[#allocation8 + $0x68] sm:$0xff]  }
  0x8a   :  { %747 = vmatprep.subr.bf16.mxu0 %v1194_v61  ;;  %719 = vmatpush1.bf16.msra.mxu1 %v1207_v5  ;;  %v1238_v61 = vld [vmem:[#allocation8 + $0x70] sm:$0xff]   ;;  %v358_v5 = vld [vmem:[%s1501_s4] sm:$0x3] }
  0x8b   :  { %720 = vmatprep.subr.bf16.mxu1 %v1208_v6  ;;  %v363_v6 = vrot.slane %v358_v5, %v102_v21 }
  0x8d   :  { %748 = vmatpush1.bf16.msra.mxu0 %v1192_v63  ;;  %v1240_v63 = vld [vmem:[#allocation8 + $0x78] sm:$0xff]  }
  0x8e   :  { %749 = vmatprep.subr.bf16.mxu0 %v1200_v0  ;;  %721 = vmatpush1.bf16.msra.mxu1 %v1213_v9  ;;  %v1241_v0 = vld [vmem:[#allocation8 + $0x38] sm:$0xff]  }
  0x8f   :  { %1068 = vmatprep.subr.bf16.mxu1 %v1226_v18 }
  0x91   :  { %750 = vmatpush1.bf16.msra.mxu0 %v1198_v1 }
  0x92   :  { %751 = vmatprep.subr.bf16.mxu0 %v1206_v3 }
  0x95   :  { %752 = vmatpush1.bf16.msra.mxu0 %v1204_v4 }
  0x96   :  { %753 = vmatprep.subr.bf16.mxu0 %v1212_v7  ;;  %v367_v7 = vrot.slane %v358_v5, %v106_v23 }
  0x99   :  { %754 = vmatpush1.bf16.msra.mxu0 %v1210_v8 }
  0x9a   :  { %755 = vmatprep.subr.bf16.mxu0 %v1216_v10 }
  0x9d   :  { %756 = vmatpush1.bf16.msra.mxu0 %v1214_v11 }
  0x9e   :  { %757 = vmatprep.subr.bf16.mxu0 %v1219_v12 }
  0xa1   :  { %758 = vmatpush1.bf16.msra.mxu0 %v1217_v13 }
  0xa2   :  { %759 = vmatprep.subr.bf16.mxu0 %v1222_v14 }
  0xa5   :  { %760 = vmatpush1.bf16.msra.mxu0 %v1220_v15 }
  0xa6   :  { %761 = vmatprep.subr.bf16.mxu0 %v1225_v16 }
  0xa9   :  { %762 = vmatpush1.bf16.msra.mxu0 %v1223_v17 }
 0x12f   :  { %v238_v26 = vpop.f32.mrb[0].mxu0 }
 0x130   :  { %v239_v27 = vadd.f32 %v238_v26, %v103_v24  ;;  %v240_v28 = vpop.f32.mrb[1].mxu0 }
 0x131   :  { %v241_v29 = vadd.f32 %v240_v28, %v107_v25  ;;  %v242_v30 = vpop.f32.mrb[2].mxu0 }
 0x132   :  { %v286_v31 = vmax.f32 %v239_v27, 0.0  ;;  %v243_v32 = vpop.f32.mrb[3].mxu0 }
 0x133   :  { %v287_v33 = vmax.f32 %v241_v29, 0.0 }
 0x134   :  { %v290_v34 = vpack.c.bf16 %v286_v31, %v286_v31 }
 0x135   :  { %v291_v35 = vpack.c.bf16 %v287_v33, %v287_v33 }
 0x137   :  { %722 = vmatprep.mubr.bf16.mxu1 %v291_v35 }
 0x138   :  { %723 = vmatmul.mubr.bf16.vlgmr.msra.gmra.mrb[0].mxu1 %v290_v34 }
 0x139   :  { %1069 = vmatpush3.bf16.msra.mxu1 %v1227_v36 }
 0x13a   :  { %1070 = vmatprep.subr.bf16.mxu1 %v1228_v37 }
 0x13d   :  { %1071 = vmatpush3.bf16.msra.mxu1 %v1229_v40 }
 0x13e   :  { %1072 = vmatprep.subr.bf16.mxu1 %v1230_v53 }
 0x13f   :  { %v279_v43 = vpop.f32.mrb[4].mxu0 }
 0x140   :  { %v280_v44 = vadd.f32 %v279_v43, %v111_v41  ;;  %v281_v45 = vpop.f32.mrb[5].mxu0 }
 0x141   :  { %v282_v46 = vadd.f32 %v281_v45, %v115_v42  ;;  %v283_v47 = vpop.f32.mrb[6].mxu0  ;;  %1073 = vmatpush3.bf16.msra.mxu1 %v1231_v54 }
 0x142   :  { %v288_v48 = vmax.f32 %v280_v44, 0.0  ;;  %v284_v49 = vpop.f32.mrb[7].mxu0  ;;  %1074 = vmatprep.subr.bf16.mxu1 %v1232_v55 }
 0x143   :  { %v289_v50 = vmax.f32 %v282_v46, 0.0 }
 0x144   :  { %v292_v52 = vpack.c.bf16 %v288_v48, %v288_v48 }
 0x145   :  { %v293_v51 = vpack.c.bf16 %v289_v50, %v289_v50  ;;  %1075 = vmatpush3.bf16.msra.mxu1 %v1233_v56 }
 0x146   :  { %1076 = vmatprep.subr.bf16.mxu1 %v1234_v57 }
 0x147   :  { %763 = vmatprep.mubr.bf16.mxu0 %v293_v51 }
 0x148   :  { %764 = vmatmul.mubr.bf16.vlgmr.msra.gmra.mrb[8].mxu0 %v292_v52 }
 0x149   :  { %1077 = vmatpush3.bf16.msra.mxu1 %v1235_v58 }
 0x14a   :  { %1078 = vmatprep.subr.bf16.mxu1 %v1236_v59 }
 0x14d   :  { %1079 = vmatpush3.bf16.msra.mxu1 %v1237_v60 }
 0x14e   :  { %1080 = vmatprep.subr.bf16.mxu1 %v1238_v61 }
 0x151   :  { %1081 = vmatpush3.bf16.msra.mxu1 %v1239_v62 }
 0x152   :  { %1082 = vmatprep.subr.bf16.mxu1 %v1240_v63 }
 0x155   :  { %1083 = vmatpush3.bf16.msra.mxu1 %v1241_v0 }
 0x20b   :  { %v724_v1 = vpop.f32.mrb[0].mxu1 }
 0x20c   :  { %v726_v2 = vpop.f32.mrb[1].mxu1  ;;  %v725_v8 = vadd.f32 %v724_v1, %v363_v6 }
 0x20d   :  { %v728_v3 = vpop.f32.mrb[2].mxu1  ;;  %v727_v9 = vadd.f32 %v726_v2, %v367_v7 }
 0x20e   :  { %v729_v4 = vpop.f32.mrb[3].mxu1 }
 0x21b   :  { %v765_v10 = vpop.f32.mrb[8].mxu0 }
 0x21c   :  { %v766_v11 = vadd.f32 %v765_v10, %v725_v8  ;;  %v767_v12 = vpop.f32.mrb[9].mxu0 }
 0x21d   :  { %v768_v13 = vadd.f32 %v767_v12, %v727_v9  ;;  %v769_v14 = vpop.f32.mrb[10].mxu0 }
 0x21e   :  { %v772_v15 = vmax.f32 %v766_v11, 0.0  ;;  %v770_v16 = vpop.f32.mrb[11].mxu0 }
 0x21f   :  { %v773_v17 = vmax.f32 %v768_v13, 0.0 }
 0x220   :  { %v774_v19 = vpack.c.bf16 %v772_v15, %v772_v15 }
 0x221   :  { %v775_v18 = vpack.c.bf16 %v773_v17, %v773_v17 }
 0x223   :  { %943 = vmatprep.mubr.bf16.mxu1 %v775_v18 }
 0x224   :  { %944 = vmatmul.mubr.bf16.vlgmr.msra.gmra.mrb[4].mxu1 %v774_v19 }
 0x2f7   :  { %v1084_v22 = vpop.f32.mrb[4].mxu1 }
 0x2f8   :  { %v1085_v21 = vpop.f32.mrb[5].mxu1 }
 0x2f9   :  { %v1086_v23 = vadd.f32 %v1085_v21, %v1084_v22  ;;  %v1087_v24 = vpop.f32.mrb[6].mxu1 }
 0x2fa   :  { %v1088_v25 = vpop.f32.mrb[7].mxu1 }
 0x2fb   :  { %v946_v26 = vadd.f32 %v1086_v23, %v1051_v20 }
 0x2fd   :  { %951 = vst [vmem:[#allocation10] sm:$0xff] %v946_v26 }
 0x2fe   :  { %1341 = shalt.err (!%p1338_p8)
}
 0x2ff   :  { %s1342_s6 = scalar_lea.hbm %s1504_s7, 128 }
 0x300   :  { %p1343_p9 = scmp.ne.s32.totalorder %s1504_s7, %s1342_s6  ;;  %p1346_p10 = scmp.lt.u32.totalorder %s1342_s6, %s1504_s7 }
 0x302   :  { %p1348_p11 = pnand %p1346_p10, %p1343_p9 }
 0x304   :  { %1351 = shalt.err (!%p1348_p11)
}
 0x305   :  { %961 = dma.vmem_to_hbm [thread:$0]  %s959_s9, 128, %s1504_s7, [#allocation4]  }
 0x306   :  { %1358 = dma.done.wait [#allocation4], 128  }
 0x307   :  { %1359 = vsyncadd [#allocation4], 4294967168 }
 0x308   :  { %965 = vsyncpa [#allocation3], 1 }
 0x309   :  { %966 = vsyncpa [#allocation6], 1 }
 0x30a   :  { %967 = vsyncpa [#allocation9], 1 }
 0x30b   :  { %968 = vsyncpa [#allocation4], 1 }

</bundles_post_ra>
